<compile_context>
chip_gen: v5e
topology: v5e:2x2
jax: 0.10.0
libtpu: 0.0.40
codegen_flags: <defaults>
</compile_context>

<pallas_src>
import jax
import jax.numpy as jnp
from jax import lax
from jax.experimental import pallas as pl
from jax.experimental.pallas import tpu as pltpu

_LANE = 128


def _cdiv(a, b):
    return (a + b - 1) // b


def _round_up(a, b):
    return _cdiv(a, b) * b


def quantile_loss(preds, target, quantiles, *, max_rows_per_tile=2048):
    """Pallas TPU forward pass of QuantileLoss.

    preds:     (B, Q) float32 / bfloat16 — column i holds quantile i's prediction
    target:    (B, 1) or (B,) float32 / bfloat16
    quantiles: python sequence of Q floats (compile-time constants)
    returns:   scalar float32 == torch.sum(torch.cat(losses, 1)) of the module.
    """
    B, Q = preds.shape
    q_const = tuple(float(q) for q in quantiles)
    assert len(q_const) == Q
    target = jnp.reshape(target, (-1,))
    assert target.shape[0] == B

    # ---- lane-dense layout: batch on the 128-wide lane axis ----------------
    b_pad = max(_LANE, _round_up(B, _LANE))       # pad only to the next 128 lanes
    n_rows = b_pad // _LANE
    preds_t = preds.T                             # (Q, B)   (layout copy, see TODO)
    target_t = target.reshape(1, B)               # (1, B)   (free reshape)
    if b_pad != B:
        # zero padding -> errors == 0 -> zero loss contribution
        preds_t = jnp.pad(preds_t, ((0, 0), (0, b_pad - B)))
        target_t = jnp.pad(target_t, ((0, 0), (0, b_pad - B)))
    preds3 = preds_t.reshape(Q, n_rows, _LANE)    # free row-major reshapes
    target3 = target_t.reshape(1, n_rows, _LANE)

    # ---- tile selection -----------------------------------------------------
    # sublane alignment: 8 rows for 32-bit inputs, 16 rows for 16-bit inputs
    itemsize = min(preds.dtype.itemsize, target.dtype.itemsize)
    sub_align = 8 if itemsize >= 4 else 16

    if n_rows <= max_rows_per_tile:
        SUB, num_tiles = n_rows, 1                # full-extent block: always legal
        NC, TPC = 1, 1
    else:
        SUB = max(sub_align, (max_rows_per_tile // sub_align) * sub_align)
        num_tiles = _cdiv(n_rows, SUB)
        if num_tiles % 2:
            alt = SUB - sub_align                 # one shrink attempt -> even count
            if alt >= sub_align and _cdiv(n_rows, alt) % 2 == 0:
                SUB, num_tiles = alt, _cdiv(n_rows, alt)
        # v7x: split the streaming reduce across both TensorCores when the
        # tile count divides evenly.  NC * TPC == num_tiles by construction,
        # so no grid step ever points at a fully out-of-bounds block.
        NC = 2 if num_tiles % 2 == 0 else 1
        TPC = num_tiles // NC
    ragged = (num_tiles * SUB != n_rows)

    # ---- kernel -------------------------------------------------------------
    def kernel(preds_ref, target_ref, out_ref, acc_ref):
        c = pl.program_id(0)                      # core / partial-sum index
        i = pl.program_id(1)                      # streaming tile index (reduction)

        @pl.when(i == 0)
        def _init():
            acc_ref[...] = jnp.zeros_like(acc_ref)

        # DMA stays in the input dtype; upcast to f32 for the arithmetic.
        t = target_ref[0].astype(jnp.float32)                 # (SUB, 128)

        # pinball loss with d = p - t:
        #   max((q-1)*(t-p), q*(t-p)) == max(d, 0) - q*d
        contrib = None
        for k in range(Q):                        # Q is small & compile-time static
            d = preds_ref[k].astype(jnp.float32) - t          # (SUB, 128)
            term = jnp.maximum(d, 0.0) - q_const[k] * d       # python-float scalar
            contrib = term if contrib is None else contrib + term

        g = c * TPC + i                           # global tile index
        if ragged:
            @pl.when(g < num_tiles - 1)
            def _accum_full():
                acc_ref[...] += contrib

            @pl.when(g == num_tiles - 1)
            def _accum_tail():
                # Rows >= n_rows of the last block were never DMA'd (values
                # unspecified) -> mask them out before accumulating.
                r = lax.broadcasted_iota(jnp.int32, (SUB, _LANE), 0)
                valid = (g * SUB + r) < n_rows
                acc_ref[...] += jnp.where(valid, contrib, 0.0)
        else:
            acc_ref[...] += contrib

        @pl.when(i == pl.num_programs(1) - 1)
        def _finalize():
            out_ref[0, 0] = jnp.sum(acc_ref[...])  # one XLU reduce + SMEM store / core

    # ---- VMEM budget: double-buffered inputs + f32 accumulator + headroom ----
    block_bytes = SUB * _LANE * (Q * preds.dtype.itemsize + target.dtype.itemsize)
    acc_bytes = SUB * _LANE * 4
    vmem_limit = int(min(max(2 * block_bytes + acc_bytes + (8 << 20), 32 << 20),
                         128 << 20))

    partials = pl.pallas_call(
        kernel,
        out_shape=jax.ShapeDtypeStruct((NC, 1), jnp.float32),
        grid_spec=pltpu.PrefetchScalarGridSpec(
            num_scalar_prefetch=0,
            grid=(NC, TPC),
            in_specs=[
                pl.BlockSpec((Q, SUB, _LANE), lambda c, i: (0, c * TPC + i, 0)),
                pl.BlockSpec((1, SUB, _LANE), lambda c, i: (0, c * TPC + i, 0)),
            ],
            out_specs=pl.BlockSpec((1, 1), lambda c, i: (c, 0),
                                   memory_space=pltpu.MemorySpace.SMEM),
            scratch_shapes=[pltpu.VMEM((SUB, _LANE), jnp.float32)],
        ),
        compiler_params=pltpu.CompilerParams(
            dimension_semantics=("parallel", "arbitrary"),
            vmem_limit_bytes=vmem_limit,
        ),
    )(preds3, target3)

    return jnp.sum(partials)


def quantile_loss_ref(preds, target, quantiles):
    """Pure-JAX reference mirroring the PyTorch module exactly."""
    preds = preds.astype(jnp.float32)
    target = target.astype(jnp.float32).reshape(-1, 1)
    losses = []
    for i, qu in enumerate(quantiles):
        errors = target - preds[:, i][:, None]
        losses.append(jnp.maximum((qu - 1.0) * errors, qu * errors))
    return jnp.sum(jnp.concatenate(losses, axis=1))


if __name__ == "__main__":
    quantiles = [0.1, 0.5, 0.9]
    Q = len(quantiles)
    key = jax.random.PRNGKey(0)
    k1, k2, k3, k4 = jax.random.split(key, 4)

    # 1) small batch (single tile, ragged 128-lane tail handled by zero pad)
    B = 300
    preds = jax.random.normal(k1, (B, Q), dtype=jnp.float32)
    target = jax.random.normal(k2, (B, 1), dtype=jnp.float32)
    ref = quantile_loss_ref(preds, target, quantiles)
    out = jax.block_until_ready(quantile_loss(preds, target, quantiles))
    assert jnp.allclose(out, ref, rtol=1e-5, atol=1e-3), (out, ref)

    # 2) forced multi-tile path: 2 "parallel" partial sums, streaming f32
    #    accumulator, ragged last tile masked in-kernel
    #    (B=3112 -> 25 rows of 128 lanes -> 4 tiles of 8 rows, 2 per core)
    B2 = 3112
    preds2 = jax.random.normal(k3, (B2, Q), dtype=jnp.float32)
    target2 = jax.random.normal(k4, (B2, 1), dtype=jnp.float32)
    ref2 = quantile_loss_ref(preds2, target2, quantiles)
    out2 = jax.block_until_ready(
        quantile_loss(preds2, target2, quantiles, max_rows_per_tile=8))
    assert jnp.allclose(out2, ref2, rtol=1e-5, atol=1e-2), (out2, ref2)

    # 3) bf16 preds stay bf16 through the DMA; arithmetic in f32 inside
    preds_bf = preds.astype(jnp.bfloat16)
    ref3 = quantile_loss_ref(preds_bf.astype(jnp.float32), target, quantiles)
    out3 = jax.block_until_ready(quantile_loss(preds_bf, target, quantiles))
    assert jnp.allclose(out3, ref3, rtol=1e-4, atol=1e-2), (out3, ref3)

    print("KERNEL_OK")
</pallas_src>

<mosaic_0001>
module attributes {stable_mosaic.version = 11 : i64} {
  func.func @kernel(%arg0: i32, %arg1: i32, %arg2: memref<3x3x128xf32, #tpu.memory_space<vmem>>, %arg3: memref<1x3x128xf32, #tpu.memory_space<vmem>>, %arg4: memref<1x1xf32, #tpu.memory_space<smem>>, %arg5: memref<3x128xf32, #tpu.memory_space<vmem>>) attributes {dimension_semantics = [#tpu.dimension_semantics<parallel>, #tpu.dimension_semantics<arbitrary>], iteration_bounds = array<i64: 1, 1>, scalar_prefetch = 0 : i64, scratch_operands = 1 : i64, tpu.core_type = #tpu.core_type<tc>, window_params = [{transform_indices = @transform_0, window_bounds = array<i64: 3, 3, 128>}, {transform_indices = @transform_1, window_bounds = array<i64: 1, 3, 128>}, {transform_indices = @transform_2, window_bounds = array<i64: 1, 1>}]} {
    %c0_i32 = arith.constant 0 : i32
    %0 = arith.cmpi eq, %arg1, %c0_i32 : i32
    %1 = arith.extui %0 : i1 to i32
    %c0_i32_0 = arith.constant 0 : i32
    %2 = arith.cmpi ne, %1, %c0_i32_0 : i32
    scf.if %2 {
      %cst_21 = arith.constant 0.000000e+00 : f32
      %37 = vector.broadcast %cst_21 : f32 to vector<3x128xf32>
      %c0_22 = arith.constant 0 : index
      %c0_23 = arith.constant 0 : index
      %38 = vector.load %arg5[%c0_22, %c0_23] : memref<3x128xf32, #tpu.memory_space<vmem>>, vector<3x128xf32>
      tpu.vector_store %arg5[%c0_22, %c0_23], %37 {strides = array<i32>} : memref<3x128xf32, #tpu.memory_space<vmem>>, vector<3x128xf32>,
    } else {
    }
    %c0 = arith.constant 0 : index
    %c0_1 = arith.constant 0 : index
    %c0_2 = arith.constant 0 : index
    %3 = vector.load %arg3[%c0, %c0_1, %c0_2] : memref<1x3x128xf32, #tpu.memory_space<vmem>>, vector<1x3x128xf32>
    %4 = vector.shape_cast %3 : vector<1x3x128xf32> to vector<3x128xf32>
    %c0_3 = arith.constant 0 : index
    %c0_4 = arith.constant 0 : index
    %c0_5 = arith.constant 0 : index
    %5 = vector.load %arg2[%c0_3, %c0_4, %c0_5] : memref<3x3x128xf32, #tpu.memory_space<vmem>>, vector<1x3x128xf32>
    %6 = vector.shape_cast %5 : vector<1x3x128xf32> to vector<3x128xf32>
    %7 = arith.subf %6, %4 : vector<3x128xf32>
    %cst = arith.constant 0.000000e+00 : f32
    %8 = vector.broadcast %cst : f32 to vector<3x128xf32>
    %9 = arith.maximumf %7, %8 : vector<3x128xf32>
    %cst_6 = arith.constant 1.000000e-01 : f32
    %10 = vector.broadcast %cst_6 : f32 to vector<3x128xf32>
    %11 = arith.mulf %10, %7 : vector<3x128xf32>
    %12 = arith.subf %9, %11 : vector<3x128xf32>
    %c1 = arith.constant 1 : index
    %c0_7 = arith.constant 0 : index
    %c0_8 = arith.constant 0 : index
    %13 = vector.load %arg2[%c1, %c0_7, %c0_8] : memref<3x3x128xf32, #tpu.memory_space<vmem>>, vector<1x3x128xf32>
    %14 = vector.shape_cast %13 : vector<1x3x128xf32> to vector<3x128xf32>
    %15 = arith.subf %14, %4 : vector<3x128xf32>
    %cst_9 = arith.constant 0.000000e+00 : f32
    %16 = vector.broadcast %cst_9 : f32 to vector<3x128xf32>
    %17 = arith.maximumf %15, %16 : vector<3x128xf32>
    %cst_10 = arith.constant 5.000000e-01 : f32
    %18 = vector.broadcast %cst_10 : f32 to vector<3x128xf32>
    %19 = arith.mulf %18, %15 : vector<3x128xf32>
    %20 = arith.subf %17, %19 : vector<3x128xf32>
    %21 = arith.addf %12, %20 : vector<3x128xf32>
    %c2 = arith.constant 2 : index
    %c0_11 = arith.constant 0 : index
    %c0_12 = arith.constant 0 : index
    %22 = vector.load %arg2[%c2, %c0_11, %c0_12] : memref<3x3x128xf32, #tpu.memory_space<vmem>>, vector<1x3x128xf32>
    %23 = vector.shape_cast %22 : vector<1x3x128xf32> to vector<3x128xf32>
    %24 = arith.subf %23, %4 : vector<3x128xf32>
    %cst_13 = arith.constant 0.000000e+00 : f32
    %25 = vector.broadcast %cst_13 : f32 to vector<3x128xf32>
    %26 = arith.maximumf %24, %25 : vector<3x128xf32>
    %cst_14 = arith.constant 0.899999976 : f32
    %27 = vector.broadcast %cst_14 : f32 to vector<3x128xf32>
    %28 = arith.mulf %27, %24 : vector<3x128xf32>
    %29 = arith.subf %26, %28 : vector<3x128xf32>
    %30 = arith.addf %21, %29 : vector<3x128xf32>
    %c0_15 = arith.constant 0 : index
    %c0_16 = arith.constant 0 : index
    %31 = vector.load %arg5[%c0_15, %c0_16] : memref<3x128xf32, #tpu.memory_space<vmem>>, vector<3x128xf32>
    %32 = arith.addf %31, %30 : vector<3x128xf32>
    %c0_17 = arith.constant 0 : index
    %c0_18 = arith.constant 0 : index
    %33 = vector.load %arg5[%c0_17, %c0_18] : memref<3x128xf32, #tpu.memory_space<vmem>>, vector<3x128xf32>
    tpu.vector_store %arg5[%c0_17, %c0_18], %32 {strides = array<i32>} : memref<3x128xf32, #tpu.memory_space<vmem>>, vector<3x128xf32>,
    %c0_i32_19 = arith.constant 0 : i32
    %34 = arith.cmpi eq, %arg1, %c0_i32_19 : i32
    %35 = arith.extui %34 : i1 to i32
    %c0_i32_20 = arith.constant 0 : i32
    %36 = arith.cmpi ne, %35, %c0_i32_20 : i32
    scf.if %36 {
      %c0_21 = arith.constant 0 : index
      %c0_22 = arith.constant 0 : index
      %37 = vector.load %arg5[%c0_21, %c0_22] : memref<3x128xf32, #tpu.memory_space<vmem>>, vector<3x128xf32>
      %38 = vector.shape_cast %37 : vector<3x128xf32> to vector<1x3x128xf32>
      %cst_23 = arith.constant dense<0.000000e+00> : vector<1xf32>
      %39 = vector.multi_reduction <add>, %38, %cst_23 [1, 2] : vector<1x3x128xf32> to vector<1xf32>
      %40 = vector.shape_cast %39 : vector<1xf32> to vector<1x1x1xf32>
      %41 = vector.extract %40[0, 0, 0] : f32 from vector<1x1x1xf32>
      %c0_24 = arith.constant 0 : index
      %c0_25 = arith.constant 0 : index
      %42 = memref.load %arg4[%c0_24, %c0_25] : memref<1x1xf32, #tpu.memory_space<smem>>
      memref.store %41, %arg4[%c0_24, %c0_25] : memref<1x1xf32, #tpu.memory_space<smem>>
    } else {
    }
    return
  }
  func.func @transform_0(%arg0: i32, %arg1: i32) -> (i32, i32, i32) {
    %c1_i32 = arith.constant 1 : i32
    %0 = arith.muli %arg0, %c1_i32 : i32
    %1 = arith.addi %0, %arg1 : i32
    %c0_i32 = arith.constant 0 : i32
    %c0_i32_0 = arith.constant 0 : i32
    %c0_i32_1 = arith.constant 0 : i32
    return %c0_i32, %1, %c0_i32_0 : i32, i32, i32
  }
  func.func @transform_1(%arg0: i32, %arg1: i32) -> (i32, i32, i32) {
    %c1_i32 = arith.constant 1 : i32
    %0 = arith.muli %arg0, %c1_i32 : i32
    %1 = arith.addi %0, %arg1 : i32
    %c0_i32 = arith.constant 0 : i32
    %c0_i32_0 = arith.constant 0 : i32
    %c0_i32_1 = arith.constant 0 : i32
    return %c0_i32, %1, %c0_i32_0 : i32, i32, i32
  }
  func.func @transform_2(%arg0: i32, %arg1: i32) -> (i32, i32) {
    %c0_i32 = arith.constant 0 : i32
    %c0_i32_0 = arith.constant 0 : i32
    return %arg0, %c0_i32 : i32, i32
  }
}

</mosaic_0001>

<bundles_post_ra>
// kernel: tpu_custom_call.1
= control target key start
LH: loop header
LB: loop body
LE: loop exit
PB: predicated region body
PF: predicated region fallthrough
CT: control target
= control target key end

     0   :  { %7 = vsyncpa [#allocation4], 0  ;;  %s192_s0 = inlined_call_operand.hbm [shape: f32[3,3,128], index: 0, kind: input, shape index: {}]   ;;  %s193_s1 = inlined_call_operand.vmem [shape: f32[1,3,128], index: 1, kind: input, shape index: {}]   ;;  %s194_s2 = inlined_call_operand.hbm [shape: f32[1,1], index: 2, kind: output, shape index: {}]  }
   0x1   :  { %8 = vsyncpa [#allocation5], 0  ;;  %s16_s11 = sshll.u32 %s192_s0, 4  ;;  %s163_s12 = smov [#allocation3]   ;;  %s17_s11 = int_to_ptr.hbm [resolvable:$true] %s16_s11 }
   0x2   :  { %s18_s13 = sshll.u32 %s163_s12, 4  ;;  %s164_s14 = smov 64   ;;  %s19_s13 = int_to_ptr.vmem [resolvable:$true] %s18_s13 }
   0x3   :  { %s165_s15 = smov 4  }
   0x4   :  { %24 = dma.hbm_to_vmem [thread:$0]  %s17_s11, 192, %s19_s13, [#allocation4], %s164_s14, %s164_s14, %s165_s15  }
   0x5   :  { %159 = dma.done.wait [#allocation4], 192  }
   0x6   :  { %160 = vsyncadd [#allocation4], 4294967104  ;;  %v166_v0 = vmov 0.0   ;;  %v54_v1 = vld [vmem:[%s193_s1] sm:$0x7]  ;;  %vm81_vm0 = vcmask 1042432  }
   0x7   :  { %53 = vst [vmem:[#allocation2] sm:$0x7] %v166_v0  ;;  %v55_v2 = vld [vmem:[#allocation3] sm:$0x7]  ;;  %v61_v3 = vld [vmem:[#allocation3 + $0x4] sm:$0x7] }
   0x8   :  { %v56_v4 = vsub.f32 %v55_v2, %v54_v1  ;;  %v62_v5 = vsub.f32 %v61_v3, %v54_v1  ;;  %v68_v6 = vld [vmem:[#allocation3 + $0x8] sm:$0x7]  ;;  %s99_s18 = sshll.u32 %s194_s2, 4  ;;  %s167_s20 = smov [#allocation6]   ;;  %s100_s18 = int_to_ptr.hbm [resolvable:$true] %s99_s18 }
   0x9   :  { %v69_v7 = vsub.f32 %v68_v6, %v54_v1 }
   0xa   :  { %v57_v8 = vmax.f32 %v56_v4, 0.0  ;;  %v58_v9 = vmul.f32 0.1, %v56_v4  ;;  %v63_v10 = vmax.f32 %v62_v5, 0.0  ;;  %v64_v11 = vmul.f32 0.5, %v62_v5 }
   0xb   :  { %v70_v12 = vmax.f32 %v69_v7, 0.0  ;;  %v71_v13 = vmul.f32 0.9, %v69_v7 }
   0xc   :  { %v59_v14 = vsub.f32 %v57_v8, %v58_v9  ;;  %v65_v15 = vsub.f32 %v63_v10, %v64_v11 }
   0xd   :  { %v72_v16 = vsub.f32 %v70_v12, %v71_v13 }
   0xe   :  { %v66_v17 = vadd.f32 %v65_v15, %v59_v14  ;;  %v74_v18 = vld [vmem:[#allocation2] sm:$0x7] }
  0x10   :  { %v73_v19 = vadd.f32 %v72_v16, %v66_v17 }
  0x12   :  { %v75_v20 = vadd.f32 %v74_v18, %v73_v19 }
  0x14   :  { %76 = vst [vmem:[#allocation2] sm:$0x7] %v75_v20 }
  0x1b   :  { %v80_v21 = vld [vmem:[#allocation2] sm:$0x7] }
  0x1c   :  { %v82_v22 = vsel %vm81_vm0, %v80_v21, 0.0 }
  0x1d   :  { %83 = vadd.xlane.f32.xlu0 %v82_v22 }
  0x90   :  { %v84_v23 = vpop.xlane.xlu0 %83 }
  0x91   :  { %v85_v24 = vrot.slane %v84_v23, 4 }
  0x93   :  { %v86_v25 = vadd.f32 %v85_v24, %v84_v23 }
  0x95   :  { %v87_v26 = vrot.slane %v86_v25, 2 }
  0x97   :  { %v88_v27 = vadd.f32 %v87_v26, %v86_v25 }
  0x99   :  { %v89_v28 = vrot.slane %v88_v27, 1 }
  0x9b   :  { %v90_v29 = vadd.f32 %v89_v28, %v88_v27 }
  0x9d   :  { %116 = vpush %v90_v29 }
  0xce   :  { %s117_s19 = spop %116 }
  0xcf   :  { %93 = sst [smem:[#allocation6]] %s117_s19 }
  0xd0   :  { %102 = dma.smem_to_hbm %s167_s20, 16, %s100_s18, [#allocation5]  }
  0xd1   :  { %161 = dma.done.wait [#allocation5], 16  }
  0xd2   :  { %162 = vsyncadd [#allocation5], 4294967280 }
  0xd3   :  { %107 = sfence }
  0xd4   :  { %108 = vsyncpa [#allocation4], 1 }
  0xd5   :  { %109 = vsyncpa [#allocation5], 1 }

</bundles_post_ra>
